<compile_context>
chip_gen: v7x
topology: tpu7x:2x2x1
jax: 0.10.0
libtpu: 0.0.40
codegen_flags: <defaults>
</compile_context>

<pallas_src>
import jax
import jax.numpy as jnp
from jax.experimental import pallas as pl
from jax.experimental.pallas import tpu as pltpu

_PACK = 8           # original rows packed per lane-dense kernel row
_TILE_R_MAX = 1024  # max packed rows per grid step (multiple of 8)
_MIN_GRID = 8       # keep >= this many grid steps when work allows (v7x 2 TCs)


def _lstm_cell_kernel(x_ref, w_ref, b_ref, o_ref):
    """Fused LSTM cell (h0 = c0 = 0) on lane-packed rows.

    x_ref: (TR, PACK*D)       f32    cast to bf16 in-kernel (saves host pass)
    w_ref: (PACK*D, 3*PACK*H) bf16   block-diagonal, slabs = [i | g | o]
    b_ref: (1, 3*PACK*H)      f32
    o_ref: (TR, PACK*H)       bf16   lane-dense (multiple of 128)
    """
    ph = o_ref.shape[-1]  # PACK * H
    x = x_ref[...].astype(jnp.bfloat16)                       # free VPU cast
    z = jnp.dot(x, w_ref[...], preferred_element_type=jnp.float32)
    z = (z + b_ref[...]).astype(jnp.bfloat16)                 # bf16 epilogue
    # sigmoid(x) == 0.5 * (tanh(0.5*x) + 1): single EUP pass per element.
    i_gate = 0.5 * (jnp.tanh(0.5 * z[:, 0 * ph:1 * ph]) + 1.0)
    g_gate = jnp.tanh(z[:, 1 * ph:2 * ph])
    o_gate = 0.5 * (jnp.tanh(0.5 * z[:, 2 * ph:3 * ph]) + 1.0)
    c = i_gate * g_gate
    o_ref[...] = (o_gate * jnp.tanh(c)).astype(o_ref.dtype)


def _choose_tiling(n_packed):
    """Pick (tile_r, grid_len): tile_r multiple of 8, small padding, and when
    there is enough work >= _MIN_GRID grid steps so both v7x TCs stay busy."""
    tile_r = min(_TILE_R_MAX, max(8, -(-n_packed // _MIN_GRID)))
    tile_r = -(-tile_r // 8) * 8                      # round up to mult of 8
    grid_len = max(1, -(-n_packed // tile_r))
    # Rebalance: with grid_len fixed, shrink tile_r so padding < ~8*grid rows.
    tile_r = -(-(-(-n_packed // grid_len)) // 8) * 8
    return tile_r, grid_len


def prepare_stock_lstm_params(w_ih, w_hh, b_ih, b_hh):
    """One-time (parameter-load-time) layout prep, hoisted off the fwd path.

    Returns (w_bd bf16, b_bd f32, H).  w_hh only enters through b_hh because
    h0 == 0 (matches the PyTorch single-step forward).
    """
    four_h, d = w_ih.shape
    h = four_h // 4
    p = _PACK
    del w_hh  # h0 == 0 -> W_hh contributes nothing
    gate_idx = jnp.array([0, 2, 3])                        # i, g, o of (i,f,g,o)
    w_t = jnp.transpose(w_ih).astype(jnp.float32)          # (D, 4H)
    wt_sel = w_t.reshape(d, 4, h)[:, gate_idx, :]          # (D, 3, H)
    eye = jnp.eye(p, dtype=jnp.float32)
    w_bd = jnp.einsum("dgh,jk->jdgkh", wt_sel, eye)        # (P, D, 3, P, H)
    w_bd = w_bd.reshape(p * d, 3 * p * h).astype(jnp.bfloat16)
    bias = (b_ih + b_hh).astype(jnp.float32).reshape(4, h)[gate_idx]  # (3, H)
    b_bd = jnp.broadcast_to(bias[:, None, :], (3, p, h)).reshape(1, 3 * p * h)
    return w_bd, b_bd, h


def stock_price_lstm_forward(technical_features, w_bd, b_bd, hidden_dim):
    """Pallas equivalent of StockPriceLSTM.forward (output in bf16).

    technical_features: (B, T, D) float32
    w_bd / b_bd: from prepare_stock_lstm_params
    returns: (B, T, H) bfloat16   (cast to f32 downstream only if required)
    """
    B, T, D = technical_features.shape
    H = hidden_dim
    P = _PACK
    N = B * T

    n_packed = -(-N // P)                                  # ceil(N / P)
    tile_r, grid_len = _choose_tiling(n_packed)
    n_packed_pad = grid_len * tile_r
    n_pad_rows = n_packed_pad * P - N

    x = technical_features.reshape(N, D).astype(jnp.float32)
    if n_pad_rows:
        x = jnp.concatenate([x, jnp.zeros((n_pad_rows, D), jnp.float32)], 0)
    x_packed = x.reshape(n_packed_pad, P * D)              # f32, no extra pass

    flops = 2 * n_packed_pad * (P * D) * (3 * P * H)       # MXU-executed flops
    transcendentals = 4 * n_packed_pad * (P * H)
    bytes_accessed = (x_packed.size * 4 + w_bd.size * 2 + b_bd.size * 4
                      + n_packed_pad * P * H * 2)

    out_packed = pl.pallas_call(
        _lstm_cell_kernel,
        out_shape=jax.ShapeDtypeStruct((n_packed_pad, P * H), jnp.bfloat16),
        grid_spec=pltpu.PrefetchScalarGridSpec(
            num_scalar_prefetch=0,
            grid=(grid_len,),
            in_specs=[
                pl.BlockSpec((tile_r, P * D), lambda i: (i, 0)),
                # constant block index -> fetched once, not re-DMA'd per step
                pl.BlockSpec((P * D, 3 * P * H), lambda i: (0, 0)),
                pl.BlockSpec((1, 3 * P * H), lambda i: (0, 0)),
            ],
            out_specs=pl.BlockSpec((tile_r, P * H), lambda i: (i, 0)),
        ),
        compiler_params=pltpu.CompilerParams(
            dimension_semantics=("parallel",),
            vmem_limit_bytes=32 * 1024 * 1024,
        ),
        cost_estimate=pl.CostEstimate(
            flops=flops,
            transcendentals=transcendentals,
            bytes_accessed=bytes_accessed,
        ),
    )(x_packed, w_bd, b_bd)

    # (n_packed_pad, P*H) is the row-major packing of (n_packed_pad*P, H).
    h = out_packed.reshape(n_packed_pad * P, H)[:N]
    return h.reshape(B, T, H)


def _reference_forward(technical_features, w_ih, w_hh, b_ih, b_hh):
    """Pure-JAX f32 reference mirroring PyTorch nn.LSTM, seq_len=1, h0=c0=0."""
    B, T, D = technical_features.shape
    H = w_hh.shape[1]
    x = technical_features.reshape(B * T, D).astype(jnp.float32)
    z = x @ w_ih.T.astype(jnp.float32) + b_ih + b_hh
    i = jax.nn.sigmoid(z[:, 0 * H:1 * H])
    g = jnp.tanh(z[:, 2 * H:3 * H])
    o = jax.nn.sigmoid(z[:, 3 * H:4 * H])
    c = i * g
    h = o * jnp.tanh(c)
    return h.reshape(B, T, H)


if __name__ == "__main__":
    B, T, D, H = 2, 8, 16, 32

    key = jax.random.PRNGKey(0)
    k_x, k_wih, k_whh, k_bih, k_bhh = jax.random.split(key, 5)

    bound = 1.0 / jnp.sqrt(jnp.float32(H))
    technical_features = jax.random.normal(k_x, (B, T, D), dtype=jnp.float32)
    w_ih = jax.random.uniform(k_wih, (4 * H, D), jnp.float32, -bound, bound)
    w_hh = jax.random.uniform(k_whh, (4 * H, H), jnp.float32, -bound, bound)
    b_ih = jax.random.uniform(k_bih, (4 * H,), jnp.float32, -bound, bound)
    b_hh = jax.random.uniform(k_bhh, (4 * H,), jnp.float32, -bound, bound)

    # Parameter prep happens once, outside the per-call forward (hoisted).
    w_bd, b_bd, H_out = prepare_stock_lstm_params(w_ih, w_hh, b_ih, b_hh)

    forward = jax.jit(stock_price_lstm_forward, static_argnums=(3,))
    out = forward(technical_features, w_bd, b_bd, H_out)
    out = jax.block_until_ready(out)

    ref = _reference_forward(technical_features, w_ih, w_hh, b_ih, b_hh)
    assert out.shape == (B, T, H)
    # bf16-streamed operands + bf16 activation epilogue + bf16 output store:
    # relaxed tolerance vs the pure-f32 reference.
    err = float(jnp.max(jnp.abs(out.astype(jnp.float32) - ref)))
    assert jnp.allclose(out.astype(jnp.float32), ref, atol=3e-2, rtol=3e-2), err

    print("KERNEL_OK")
</pallas_src>

<mosaic_0001>
module attributes {stable_mosaic.version = 11 : i64} {
  func.func @_lstm_cell_kernel(%arg0: i32, %arg1: memref<8x128xf32, #tpu.memory_space<vmem>>, %arg2: memref<128x768xbf16, #tpu.memory_space<vmem>>, %arg3: memref<1x768xf32, #tpu.memory_space<vmem>>, %arg4: memref<8x256xbf16, #tpu.memory_space<vmem>>) attributes {dimension_semantics = [#tpu.dimension_semantics<parallel>], iteration_bounds = array<i64: 1>, scalar_prefetch = 0 : i64, scratch_operands = 0 : i64, tpu.core_type = #tpu.core_type<tc>, window_params = [{transform_indices = @transform_0, window_bounds = array<i64: 8, 128>}, {pipeline_mode = #tpu.pipeline_mode<synchronous>, transform_indices = @transform_1, window_bounds = array<i64: 128, 768>}, {pipeline_mode = #tpu.pipeline_mode<synchronous>, transform_indices = @transform_2, window_bounds = array<i64: 1, 768>}, {transform_indices = @transform_3, window_bounds = array<i64: 8, 256>}]} {
    %c0 = arith.constant 0 : index
    %c0_0 = arith.constant 0 : index
    %0 = vector.load %arg1[%c0, %c0_0] : memref<8x128xf32, #tpu.memory_space<vmem>>, vector<8x128xf32>
    %1 = arith.truncf %0 : vector<8x128xf32> to vector<8x128xbf16>
    %c0_1 = arith.constant 0 : index
    %c0_2 = arith.constant 0 : index
    %2 = vector.load %arg2[%c0_1, %c0_2] : memref<128x768xbf16, #tpu.memory_space<vmem>>, vector<128x768xbf16>
    %cst = arith.constant dense<0.000000e+00> : vector<8x768xf32>
    %3 = tpu.matmul %1, %2, %cst {dimension_numbers = #tpu.dot_dimension_numbers<[1], [0], [0], [1], [0, 0, 1, 1], [], []>} : vector<8x128xbf16>, vector<128x768xbf16>, vector<8x768xf32> -> vector<8x768xf32>
    %c0_3 = arith.constant 0 : index
    %c0_4 = arith.constant 0 : index
    %4 = vector.load %arg3[%c0_3, %c0_4] : memref<1x768xf32, #tpu.memory_space<vmem>>, vector<1x768xf32>
    %5 = vector.broadcast %4 : vector<1x768xf32> to vector<8x768xf32>
    %6 = arith.addf %3, %5 : vector<8x768xf32>
    %7 = arith.truncf %6 : vector<8x768xf32> to vector<8x768xbf16>
    %8 = vector.extract_strided_slice %7 {offsets = [0, 0], sizes = [8, 256], strides = [1, 1]} : vector<8x768xbf16> to vector<8x256xbf16>
    %cst_5 = arith.constant 5.000000e-01 : bf16
    %9 = vector.broadcast %cst_5 : bf16 to vector<8x256xbf16>
    %10 = arith.mulf %9, %8 : vector<8x256xbf16>
    %11 = math.tanh %10 : vector<8x256xbf16>
    %cst_6 = arith.constant 1.000000e+00 : bf16
    %12 = vector.broadcast %cst_6 : bf16 to vector<8x256xbf16>
    %13 = arith.addf %11, %12 : vector<8x256xbf16>
    %cst_7 = arith.constant 5.000000e-01 : bf16
    %14 = vector.broadcast %cst_7 : bf16 to vector<8x256xbf16>
    %15 = arith.mulf %14, %13 : vector<8x256xbf16>
    %16 = vector.extract_strided_slice %7 {offsets = [0, 256], sizes = [8, 256], strides = [1, 1]} : vector<8x768xbf16> to vector<8x256xbf16>
    %17 = math.tanh %16 : vector<8x256xbf16>
    %18 = vector.extract_strided_slice %7 {offsets = [0, 512], sizes = [8, 256], strides = [1, 1]} : vector<8x768xbf16> to vector<8x256xbf16>
    %cst_8 = arith.constant 5.000000e-01 : bf16
    %19 = vector.broadcast %cst_8 : bf16 to vector<8x256xbf16>
    %20 = arith.mulf %19, %18 : vector<8x256xbf16>
    %21 = math.tanh %20 : vector<8x256xbf16>
    %cst_9 = arith.constant 1.000000e+00 : bf16
    %22 = vector.broadcast %cst_9 : bf16 to vector<8x256xbf16>
    %23 = arith.addf %21, %22 : vector<8x256xbf16>
    %cst_10 = arith.constant 5.000000e-01 : bf16
    %24 = vector.broadcast %cst_10 : bf16 to vector<8x256xbf16>
    %25 = arith.mulf %24, %23 : vector<8x256xbf16>
    %26 = arith.mulf %15, %17 : vector<8x256xbf16>
    %27 = math.tanh %26 : vector<8x256xbf16>
    %28 = arith.mulf %25, %27 : vector<8x256xbf16>
    %c0_11 = arith.constant 0 : index
    %c0_12 = arith.constant 0 : index
    %29 = vector.load %arg4[%c0_11, %c0_12] : memref<8x256xbf16, #tpu.memory_space<vmem>>, vector<8x256xbf16>
    tpu.vector_store %arg4[%c0_11, %c0_12], %28 {strides = array<i32>} : memref<8x256xbf16, #tpu.memory_space<vmem>>, vector<8x256xbf16>,
    return
  }
  func.func @transform_0(%arg0: i32) -> (i32, i32) {
    %c0_i32 = arith.constant 0 : i32
    %c0_i32_0 = arith.constant 0 : i32
    return %arg0, %c0_i32 : i32, i32
  }
  func.func @transform_1(%arg0: i32) -> (i32, i32) {
    %c0_i32 = arith.constant 0 : i32
    %c0_i32_0 = arith.constant 0 : i32
    %c0_i32_1 = arith.constant 0 : i32
    return %c0_i32, %c0_i32_0 : i32, i32
  }
  func.func @transform_2(%arg0: i32) -> (i32, i32) {
    %c0_i32 = arith.constant 0 : i32
    %c0_i32_0 = arith.constant 0 : i32
    %c0_i32_1 = arith.constant 0 : i32
    return %c0_i32, %c0_i32_0 : i32, i32
  }
  func.func @transform_3(%arg0: i32) -> (i32, i32) {
    %c0_i32 = arith.constant 0 : i32
    %c0_i32_0 = arith.constant 0 : i32
    return %arg0, %c0_i32 : i32, i32
  }
}

</mosaic_0001>

<bundles_post_ra>
// kernel: stock_price_lstm_forward.1
= control target key start
LH: loop header
LB: loop body
LE: loop exit
PB: predicated region body
PF: predicated region fallthrough
CT: control target
= control target key end

     0   :  { %8 = vsyncpa [#allocation3], 0  ;;  %s683_s12 = smov [#allocation2]   ;;  %s731_s0 = inlined_call_operand.vmem [shape: f32[8,128], index: 0, kind: input, shape index: {}]   ;;  %s732_s1 = inlined_call_operand.hbm [shape: bf16[128,768], index: 1, kind: input, shape index: {}]   ;;  %s733_s2 = inlined_call_operand.vmem [shape: f32[1,768], index: 2, kind: input, shape index: {}]   ;;  %s734_s3 = inlined_call_operand.vmem [shape: bf16[8,256], index: 3, kind: output, shape index: {}]  }
   0x1   :  { %s16_s13 = sshll.u32 %s683_s12, 4  ;;  %s659_s16 = scalar_lea.hbm %s732_s1, 6144  ;;  %s17_s13 = int_to_ptr.vmem [resolvable:$true] %s16_s13 }
   0x2   :  { %p660_p0 = scmp.ne.s32.totalorder %s732_s1, %s659_s16  ;;  %p663_p1 = scmp.lt.u32.totalorder %s659_s16, %s732_s1 }
   0x4   :  { %p665_p2 = pnand %p663_p1, %p660_p0 }
   0x6   :  { %668 = shalt.err (!%p665_p2)
}
   0x7   :  { %s669_s21 = scalar_lea.vmem %s17_s13, 6144  ;;  %p674_p4 = scmp.lt.s32.totalorder %s17_s13, %s17_s13 }
   0x8   :  { %p670_p3 = scmp.ne.s32.totalorder %s17_s13, %s669_s21  ;;  %p675_p5 = scmp.lt.s32.totalorder %s669_s21, %s669_s21 }
   0xa   :  { %p676_p6 = por %p675_p5, %p674_p4 }
   0xc   :  { %p677_p7 = pnand %p676_p6, %p670_p3 }
   0xe   :  { %680 = shalt.err (!%p677_p7)
}
   0xf   :  { %s684_s22 = smov 384   ;;  %s685_s23 = smov 24  }
  0x10   :  { %22 = dma.hbm_to_vmem [thread:$0]  %s732_s1, 6144, %s17_s13, [#allocation3], %s684_s22, %s684_s22, %s685_s23  }
  0x11   :  { %681 = dma.done.wait [#allocation3], 6144  }
  0x12   :  { %682 = vsyncadd [#allocation3], 4294961152  ;;  %v686_v0 = vmov 0   ;;  %v571_v1 = vld [vmem:[#allocation2 + $0x4] ss:$24 sps:$4 sm:$0xff]   ;;  %v83_v51 = vlaneseq }
  0x13   :  { %385 = vmatprep.mubr.bf16.mxu0 %v686_v0  ;;  %426 = vmatprep.mubr.bf16.mxu1 %v686_v0  ;;  %v573_v2 = vld [vmem:[#allocation2] ss:$24 sps:$4 sm:$0xff]   ;;  %v574_v3 = vld [vmem:[#allocation2 + $0x34] ss:$24 sps:$4 sm:$0xff]   ;;  %v576_v4 = vld [vmem:[#allocation2 + $0x30] ss:$24 sps:$4 sm:$0xff]  }
  0x14   :  { %353 = vmatprep.subr.bf16.mxu0 %v571_v1  ;;  %v577_v5 = vld [vmem:[#allocation2 + $0xc] ss:$24 sps:$4 sm:$0xff]   ;;  %v579_v6 = vld [vmem:[#allocation2 + $0x8] ss:$24 sps:$4 sm:$0xff]   ;;  %v583_v8 = vld [vmem:[#allocation2 + $0x3c] ss:$24 sps:$4 sm:$0xff]  }
  0x15   :  { %354 = vmatpush1.bf16.msra.mxu0 %v573_v2  ;;  %v580_v7 = vld [vmem:[#allocation2 + $0x64] ss:$24 sps:$4 sm:$0xff]   ;;  %394 = vmatprep.subr.bf16.mxu1 %v577_v5  ;;  %v585_v9 = vld [vmem:[#allocation2 + $0x38] ss:$24 sps:$4 sm:$0xff]   ;;  %v586_v11 = vld [vmem:[#allocation2 + $0x94] ss:$24 sps:$4 sm:$0xff]  }
  0x16   :  { %355 = vmatprep.subr.bf16.mxu0 %v574_v3  ;;  %395 = vmatpush1.bf16.msra.mxu1 %v579_v6  ;;  %v582_v10 = vld [vmem:[#allocation2 + $0x60] ss:$24 sps:$4 sm:$0xff]   ;;  %v589_v12 = vld [vmem:[#allocation2 + $0x6c] ss:$24 sps:$4 sm:$0xff]   ;;  %v588_v14 = vld [vmem:[#allocation2 + $0x90] ss:$24 sps:$4 sm:$0xff]  }
  0x17   :  { %396 = vmatprep.subr.bf16.mxu1 %v583_v8  ;;  %v591_v13 = vld [vmem:[#allocation2 + $0x68] ss:$24 sps:$4 sm:$0xff]   ;;  %v595_v15 = vld [vmem:[#allocation2 + $0x9c] ss:$24 sps:$4 sm:$0xff]   ;;  %v597_v17 = vld [vmem:[#allocation2 + $0x98] ss:$24 sps:$4 sm:$0xff]  }
  0x18   :  { %v592_v16 = vld [vmem:[#allocation2 + $0xc4] ss:$24 sps:$4 sm:$0xff]   ;;  %v594_v18 = vld [vmem:[#allocation2 + $0xc0] ss:$24 sps:$4 sm:$0xff]   ;;  %v598_v20 = vld [vmem:[#allocation2 + $0xf4] ss:$24 sps:$4 sm:$0xff]  }
  0x19   :  { %356 = vmatpush1.bf16.msra.mxu0 %v576_v4  ;;  %v601_v19 = vld [vmem:[#allocation2 + $0xcc] ss:$24 sps:$4 sm:$0xff]   ;;  %v603_v21 = vld [vmem:[#allocation2 + $0xc8] ss:$24 sps:$4 sm:$0xff]   ;;  %v607_v23 = vld [vmem:[#allocation2 + $0xfc] ss:$24 sps:$4 sm:$0xff]  }
  0x1a   :  { %357 = vmatprep.subr.bf16.mxu0 %v580_v7  ;;  %397 = vmatpush1.bf16.msra.mxu1 %v585_v9  ;;  %v600_v22 = vld [vmem:[#allocation2 + $0xf0] ss:$24 sps:$4 sm:$0xff]   ;;  %v604_v24 = vld [vmem:[#allocation2 + $0x124] ss:$24 sps:$4 sm:$0xff]   ;;  %v606_v25 = vld [vmem:[#allocation2 + $0x120] ss:$24 sps:$4 sm:$0xff]  }
  0x1b   :  { %398 = vmatprep.subr.bf16.mxu1 %v589_v12  ;;  %v609_v26 = vld [vmem:[#allocation2 + $0xf8] ss:$24 sps:$4 sm:$0xff]   ;;  %v613_v27 = vld [vmem:[#allocation2 + $0x12c] ss:$24 sps:$4 sm:$0xff]   ;;  %v615_v30 = vld [vmem:[#allocation2 + $0x128] ss:$24 sps:$4 sm:$0xff]  }
  0x1c   :  { %v610_v28 = vld [vmem:[#allocation2 + $0x154] ss:$24 sps:$4 sm:$0xff]   ;;  %v612_v29 = vld [vmem:[#allocation2 + $0x150] ss:$24 sps:$4 sm:$0xff]   ;;  %v31_v31 = vld [vmem:[%s731_s0] sm:$0xff]  ;;  %v84_v52 = vshrl.u32 %v83_v51, 7 }
  0x1d   :  { %358 = vmatpush1.bf16.msra.mxu0 %v582_v10  ;;  %v619_v32 = vld [vmem:[#allocation2 + $0x15c] ss:$24 sps:$4 sm:$0xff]   ;;  %v32_v34 = vpack.c.bf16 %v31_v31, %v31_v31  ;;  %v621_v35 = vld [vmem:[#allocation2 + $0x158] ss:$24 sps:$4 sm:$0xff]   ;;  %v81_v54 = vld [vmem:[%s733_s2] sm:$0x3f] }
  0x1e   :  { %359 = vmatprep.subr.bf16.mxu0 %v586_v11  ;;  %399 = vmatpush1.bf16.msra.mxu1 %v591_v13  ;;  %v618_v33 = vld [vmem:[#allocation2 + $0x14] ss:$24 sps:$4 sm:$0xff]   ;;  %v616_v36 = vld [vmem:[#allocation2 + $0x10] ss:$24 sps:$4 sm:$0xff]   ;;  %v624_v37 = vld [vmem:[#allocation2 + $0x44] ss:$24 sps:$4 sm:$0xff]  }
  0x1f   :  { %400 = vmatprep.subr.bf16.mxu1 %v595_v15  ;;  %v622_v38 = vld [vmem:[#allocation2 + $0x40] ss:$24 sps:$4 sm:$0xff]   ;;  %v627_v39 = vld [vmem:[#allocation2 + $0x74] ss:$24 sps:$4 sm:$0xff]   ;;  %v625_v40 = vld [vmem:[#allocation2 + $0x70] ss:$24 sps:$4 sm:$0xff]  }
  0x20   :  { %v630_v41 = vld [vmem:[#allocation2 + $0xa4] ss:$24 sps:$4 sm:$0xff]   ;;  %v628_v42 = vld [vmem:[#allocation2 + $0xa0] ss:$24 sps:$4 sm:$0xff]   ;;  %v633_v43 = vld [vmem:[#allocation2 + $0xd4] ss:$24 sps:$4 sm:$0xff]  }
  0x21   :  { %360 = vmatpush1.bf16.msra.mxu0 %v588_v14  ;;  %v631_v44 = vld [vmem:[#allocation2 + $0xd0] ss:$24 sps:$4 sm:$0xff]   ;;  %v636_v45 = vld [vmem:[#allocation2 + $0x104] ss:$24 sps:$4 sm:$0xff]   ;;  %v634_v46 = vld [vmem:[#allocation2 + $0x100] ss:$24 sps:$4 sm:$0xff]  }
  0x22   :  { %361 = vmatprep.subr.bf16.mxu0 %v592_v16  ;;  %401 = vmatpush1.bf16.msra.mxu1 %v597_v17  ;;  %v639_v47 = vld [vmem:[#allocation2 + $0x134] ss:$24 sps:$4 sm:$0xff]   ;;  %v637_v48 = vld [vmem:[#allocation2 + $0x130] ss:$24 sps:$4 sm:$0xff]   ;;  %v642_v49 = vld [vmem:[#allocation2 + $0x164] ss:$24 sps:$4 sm:$0xff]  }
  0x23   :  { %402 = vmatprep.subr.bf16.mxu1 %v601_v19  ;;  %v640_v50 = vld [vmem:[#allocation2 + $0x160] ss:$24 sps:$4 sm:$0xff]   ;;  %v85_v53 = vsub.s32 0, %v84_v52  ;;  %v89_v55 = vsub.s32 1, %v84_v52  ;;  %v93_v56 = vsub.s32 2, %v84_v52  ;;  %v97_v58 = vsub.s32 3, %v84_v52 }
  0x25   :  { %362 = vmatpush1.bf16.msra.mxu0 %v594_v18  ;;  %v86_v57 = vrot.slane %v81_v54, %v85_v53  ;;  %v90_v59 = vrot.slane %v81_v54, %v89_v55  ;;  %v94_v61 = vrot.slane %v81_v54, %v93_v56 }
  0x26   :  { %363 = vmatprep.subr.bf16.mxu0 %v598_v20  ;;  %403 = vmatpush1.bf16.msra.mxu1 %v603_v21 }
  0x27   :  { %404 = vmatprep.subr.bf16.mxu1 %v607_v23 }
  0x29   :  { %364 = vmatpush1.bf16.msra.mxu0 %v600_v22 }
  0x2a   :  { %365 = vmatprep.subr.bf16.mxu0 %v604_v24  ;;  %405 = vmatpush1.bf16.msra.mxu1 %v609_v26  ;;  %v101_v26 = vsub.s32 4, %v84_v52 }
  0x2b   :  { %406 = vmatprep.subr.bf16.mxu1 %v613_v27  ;;  %v105_v27 = vsub.s32 5, %v84_v52 }
  0x2d   :  { %366 = vmatpush1.bf16.msra.mxu0 %v606_v25 }
  0x2e   :  { %367 = vmatprep.subr.bf16.mxu0 %v610_v28  ;;  %407 = vmatpush1.bf16.msra.mxu1 %v615_v30  ;;  %v102_v28 = vrot.slane %v81_v54, %v101_v26 }
  0x2f   :  { %408 = vmatprep.subr.bf16.mxu1 %v619_v32 }
  0x31   :  { %368 = vmatpush1.bf16.msra.mxu0 %v612_v29  ;;  %v106_v29 = vrot.slane %v81_v54, %v105_v27 }
  0x32   :  { %435 = vmatprep.subr.bf16.mxu0 %v618_v33  ;;  %409 = vmatpush1.bf16.msra.mxu1 %v621_v35 }
  0x34   :  { %386 = vmatmul.mubr.bf16.vlgmr.msra.gmra.mrb[0].mxu0 %v32_v34 }
  0x35   :  { %436 = vmatpush1.bf16.msra.mxu0 %v616_v36  ;;  %467 = vmatprep.mubr.bf16.mxu0 %v686_v0  ;;  %v98_v0 = vrot.slane %v81_v54, %v97_v58 }
  0x36   :  { %437 = vmatprep.subr.bf16.mxu0 %v624_v37  ;;  %427 = vmatmul.mubr.bf16.vlgmr.msra.gmra.mrb[0].mxu1 %v32_v34 }
  0x39   :  { %438 = vmatpush1.bf16.msra.mxu0 %v622_v38 }
  0x3a   :  { %439 = vmatprep.subr.bf16.mxu0 %v627_v39 }
  0x3d   :  { %440 = vmatpush1.bf16.msra.mxu0 %v625_v40 }
  0x3e   :  { %441 = vmatprep.subr.bf16.mxu0 %v630_v41 }
  0x41   :  { %442 = vmatpush1.bf16.msra.mxu0 %v628_v42 }
  0x42   :  { %443 = vmatprep.subr.bf16.mxu0 %v633_v43 }
  0x45   :  { %444 = vmatpush1.bf16.msra.mxu0 %v631_v44 }
  0x46   :  { %445 = vmatprep.subr.bf16.mxu0 %v636_v45 }
  0x49   :  { %446 = vmatpush1.bf16.msra.mxu0 %v634_v46 }
  0x4a   :  { %447 = vmatprep.subr.bf16.mxu0 %v639_v47 }
  0x4d   :  { %448 = vmatpush1.bf16.msra.mxu0 %v637_v48 }
  0x4e   :  { %449 = vmatprep.subr.bf16.mxu0 %v642_v49 }
  0x51   :  { %450 = vmatpush1.bf16.msra.mxu0 %v640_v50 }
  0x54   :  { %468 = vmatmul.mubr.bf16.vlgmr.msra.gmra.mrb[4].mxu0 %v32_v34 }
 0x107   :  { %v387_v60 = vpop.f32.mrb[0].mxu0 }
 0x108   :  { %v388_v62 = vadd.f32 %v387_v60, %v86_v57  ;;  %v389_v63 = vpop.f32.mrb[1].mxu0 }
 0x109   :  { %v390_v1 = vadd.f32 %v389_v63, %v90_v59  ;;  %v391_v2 = vpop.f32.mrb[2].mxu0  ;;  %v428_v5 = vpop.f32.mrb[0].mxu1 }
 0x10a   :  { %v476_v3 = vpack.c.bf16 %v388_v62, %v388_v62  ;;  %v392_v4 = vpop.f32.mrb[3].mxu0  ;;  %v429_v7 = vadd.f32 %v428_v5, %v94_v61  ;;  %v430_v8 = vpop.f32.mrb[1].mxu1 }
 0x10b   :  { %v477_v6 = vpack.c.bf16 %v390_v1, %v390_v1  ;;  %v431_v10 = vadd.f32 %v430_v8, %v98_v0  ;;  %v432_v11 = vpop.f32.mrb[2].mxu1 }
 0x10c   :  { %v482_v9 = vmul.bf16 1056980736, %v476_v3  ;;  %v478_v13 = vpack.c.bf16 %v429_v7, %v429_v7  ;;  %v433_v14 = vpop.f32.mrb[3].mxu1 }
 0x10d   :  { %v483_v12 = vmul.bf16 1056980736, %v477_v6  ;;  %v479_v15 = vpack.c.bf16 %v431_v10, %v431_v10 }
 0x10e   :  { %643 = vtanh.bf16 %v482_v9 }
 0x10f   :  { %645 = vtanh.bf16 %v483_v12 }
 0x110   :  { %647 = vtanh.bf16 %v478_v13 }
 0x111   :  { %649 = vtanh.bf16 %v479_v15 }
 0x119   :  { %v644_v16 = vpop.eup %643 }
 0x11a   :  { %v646_v17 = vpop.eup %645  ;;  %v486_v18 = vadd.bf16 1065369472, %v644_v16 }
 0x11b   :  { %v648_v19 = vpop.eup %647  ;;  %v487_v20 = vadd.bf16 1065369472, %v646_v17 }
 0x11c   :  { %v650_v21 = vpop.eup %649  ;;  %v488_v22 = vmul.bf16 1056980736, %v486_v18 }
 0x11d   :  { %v489_v23 = vmul.bf16 1056980736, %v487_v20 }
 0x11e   :  { %v500_v24 = vmul.bf16 %v648_v19, %v488_v22 }
 0x11f   :  { %v501_v25 = vmul.bf16 %v650_v21, %v489_v23 }
 0x127   :  { %v469_v30 = vpop.f32.mrb[4].mxu0 }
 0x128   :  { %v470_v31 = vadd.f32 %v469_v30, %v102_v28  ;;  %v471_v32 = vpop.f32.mrb[5].mxu0 }
 0x129   :  { %v472_v33 = vadd.f32 %v471_v32, %v106_v29  ;;  %v473_v34 = vpop.f32.mrb[6].mxu0 }
 0x12a   :  { %v480_v35 = vpack.c.bf16 %v470_v31, %v470_v31  ;;  %v474_v36 = vpop.f32.mrb[7].mxu0 }
 0x12b   :  { %v481_v37 = vpack.c.bf16 %v472_v33, %v472_v33 }
 0x12c   :  { %v492_v38 = vmul.bf16 1056980736, %v480_v35 }
 0x12d   :  { %v493_v39 = vmul.bf16 1056980736, %v481_v37 }
 0x12e   :  { %651 = vtanh.bf16 %v492_v38 }
 0x12f   :  { %653 = vtanh.bf16 %v493_v39 }
 0x130   :  { %655 = vtanh.bf16 %v500_v24 }
 0x131   :  { %657 = vtanh.bf16 %v501_v25 }
 0x139   :  { %v652_v40 = vpop.eup %651 }
 0x13a   :  { %v654_v41 = vpop.eup %653  ;;  %v496_v42 = vadd.bf16 1065369472, %v652_v40 }
 0x13b   :  { %v497_v43 = vadd.bf16 1065369472, %v654_v41  ;;  %v656_v45 = vpop.eup %655 }
 0x13c   :  { %v498_v44 = vmul.bf16 1056980736, %v496_v42  ;;  %v658_v47 = vpop.eup %657 }
 0x13d   :  { %v499_v46 = vmul.bf16 1056980736, %v497_v43 }
 0x13e   :  { %v504_v48 = vmul.bf16 %v656_v45, %v498_v44 }
 0x13f   :  { %v505_v49 = vmul.bf16 %v658_v47, %v499_v46 }
 0x141   :  { %v566_v50 = vcombine.low %v504_v48, %v505_v49 }
 0x143   :  { %512 = vst [vmem:[%s734_s3] sm:$0xff] %v566_v50 }
 0x144   :  { %517 = vsyncpa [#allocation3], 1 }

</bundles_post_ra>
